<compile_context>
chip_gen: v7x
topology: tpu7x:2x2x1
jax: 0.10.0
libtpu: 0.0.40
codegen_flags: <defaults>
</compile_context>

<pallas_src>
import functools

import jax
import jax.numpy as jnp
from jax import lax
from jax.experimental import pallas as pl
from jax.experimental.pallas import tpu as pltpu

BN_EPS = 1e-5
COMPUTE_DTYPE = jnp.bfloat16   # MXU operand dtype (accumulation stays f32)
MAX_TILE_B = 8192              # ~512 KiB/bf16 x-tile at F0=32; fits default scoped VMEM everywhere


# ---------------------------------------------------------------------------
# Generation-aware knobs (trace-time / prepare-time, all static).
# ---------------------------------------------------------------------------
@functools.lru_cache(maxsize=1)
def _device_kind():
    try:
        return jax.devices()[0].device_kind.lower()
    except Exception:
        return ""


def _elementwise_dtype():
    kind = _device_kind()
    # v6e/v7x have bf16 VALUs -> bf16 elementwise; v5e / unknown keep f32.
    if "v6" in kind or "v7" in kind or "tpu7" in kind:
        return jnp.bfloat16
    return jnp.float32


def _num_parallel_cores():
    kind = _device_kind()
    return 2 if ("v7" in kind or "tpu7" in kind) else 1


def _round_up(x, m):
    return -(-x // m) * m


def _choose_tile_b(batch, num_parallel_cores):
    # Lane-dense tiles (multiple of 128); large to amortize per-step overhead,
    # but capped so that on multi-TC chips the grid has >= num_cores steps.
    per_core = _round_up(pl.cdiv(batch, num_parallel_cores), 128)
    return max(128, min(MAX_TILE_B, per_core))


def _vmem_limit_bytes(f0, tile_b, flat_params):
    x_bytes = f0 * tile_b * 2 * 2                                   # bf16 x tile, double-buffered
    out_bytes = tile_b * 4 * 2                                      # f32 output row, double-buffered
    w_bytes = 2 * sum(int(p.size) * p.dtype.itemsize for p in flat_params)
    max_width = max([f0] + [int(p.shape[0]) for p in flat_params])
    tmp_bytes = 4 * max_width * tile_b * 4                          # generous f32 temporaries
    needed = x_bytes + out_bytes + w_bytes + tmp_bytes
    # Generous headroom, clamped to a range valid on v5e/v6e/v7x.
    return int(min(48 * 2**20, max(32 * 2**20, 2 * needed)))


# ---------------------------------------------------------------------------
# Kernel.
# ---------------------------------------------------------------------------
def _mlp_kernel(num_layers, ew_dtype, x_ref, *refs):
    """x_ref: [F0, TILE_B] bf16 (batch on the lane axis).
    refs: per hidden layer (w [out,in] bf16, b [out,1] ew_dtype), then
          w_out [last,1] f32, b_out [1,1] f32, out_ref [1, TILE_B] f32."""
    layer_refs = refs[:2 * num_layers]
    w_out_ref = refs[2 * num_layers]
    b_out_ref = refs[2 * num_layers + 1]
    out_ref = refs[2 * num_layers + 2]

    x = x_ref[...]                                       # [F0, TILE_B] bf16
    act = x
    for i in range(num_layers):
        w = layer_refs[2 * i][...]                       # [out, in]  (BN scale folded in)
        b = layer_refs[2 * i + 1][...]                   # [out, 1]   (BN shift folded in)
        h = jnp.dot(w, x, preferred_element_type=jnp.float32)    # MXU, f32 accumulation
        act = jnp.maximum(h.astype(ew_dtype) + b, 0.0)   # bias + ReLU on the VPU
        x = act.astype(x_ref.dtype)                      # MXU operand dtype for next layer

    # Output layer ([last] -> 1): VPU broadcast-mul + XLU sublane reduce (f32),
    # avoiding a wasteful N=1 MXU matmul.
    prod = act.astype(jnp.float32) * w_out_ref[...]      # [last, TILE_B] f32
    logit = jnp.sum(prod, axis=0, keepdims=True) + b_out_ref[...]
    # Sigmoid: exp + approximate reciprocal both run on the otherwise-idle EUP slot.
    out_ref[...] = pl.reciprocal(1.0 + jnp.exp(-logit), approx=True)


# ---------------------------------------------------------------------------
# Parameter preparation (done ONCE, outside the per-call jitted path).
# ---------------------------------------------------------------------------
def prepare_params(params, num_layers):
    """Fold eval-mode BatchNorm into each Linear (W' = s*W, b' = s*(b-mean)+beta),
    cast MXU operands to bf16, and pre-transpose the embedding tables so the
    per-call gather directly produces the lane-dense [F0, B] layout."""
    ew_dtype = _elementwise_dtype()
    flat = []
    for i in range(num_layers):
        p = params["fc"][i]
        scale = p["gamma"] * lax.rsqrt(p["var"] + BN_EPS)              # [out]
        w_f = (p["w"] * scale[:, None]).astype(COMPUTE_DTYPE)          # [out, in]
        b_f = (((p["b"] - p["mean"]) * scale + p["beta"])[:, None]).astype(ew_dtype)
        flat += [w_f, b_f]
    flat += [params["w_out"].T.astype(jnp.float32),                    # [last, 1]
             params["b_out"].reshape(1, 1).astype(jnp.float32)]        # [1, 1]
    return {
        "user_table_t": params["user_table"].T.astype(COMPUTE_DTYPE),  # [emb, n_users]
        "item_table_t": params["item_table"].T.astype(COMPUTE_DTYPE),  # [emb, n_items]
        "flat": tuple(flat),
    }


# ---------------------------------------------------------------------------
# Forward.
# ---------------------------------------------------------------------------
def mlp_forward(x_t, flat_params, num_layers):
    """x_t: [F0, B] bf16 transposed activations (batch on the lane axis)."""
    f0, batch = x_t.shape
    ew_dtype = _elementwise_dtype()
    tile_b = _choose_tile_b(batch, _num_parallel_cores())
    num_tiles = pl.cdiv(batch, tile_b)   # ragged last block: padded reads, masked writes

    x_spec = pl.BlockSpec((f0, tile_b), lambda i: (0, i))
    # Weights/biases: full-array blocks + constant index_map -> fetched once,
    # resident in VMEM across all batch tiles.
    param_specs = [pl.BlockSpec(p.shape, lambda i: (0, 0)) for p in flat_params]
    out_spec = pl.BlockSpec((1, tile_b), lambda i: (0, i))

    kernel = functools.partial(_mlp_kernel, num_layers, ew_dtype)
    out = pl.pallas_call(
        kernel,
        out_shape=jax.ShapeDtypeStruct((1, batch), jnp.float32),
        grid=(num_tiles,),
        in_specs=[x_spec] + param_specs,
        out_specs=out_spec,
        compiler_params=pltpu.CompilerParams(
            dimension_semantics=("parallel",),
            vmem_limit_bytes=_vmem_limit_bytes(f0, tile_b, flat_params)),
    )(x_t, *flat_params)
    return out[0, :batch].reshape(batch, 1)


@functools.partial(jax.jit, static_argnames=("num_layers",))
def mlp_apply(prepared, user_ids, item_ids, num_layers):
    # Column gathers from pre-transposed bf16 tables + concat along features
    # directly produce the lane-dense [F0, B] input (no transpose/pad/cast passes).
    user_cols = jnp.take(prepared["user_table_t"], user_ids, axis=1)   # [emb, B]
    item_cols = jnp.take(prepared["item_table_t"], item_ids, axis=1)   # [emb, B]
    x_t = jnp.concatenate([user_cols, item_cols], axis=0)              # [F0, B] bf16
    return mlp_forward(x_t, prepared["flat"], num_layers)


# ---------------------------------------------------------------------------
# Reference (pure JAX, f32) + init.
# ---------------------------------------------------------------------------
def mlp_reference(params, user_ids, item_ids, num_layers):
    user_emb = params["user_table"][user_ids]
    item_emb = params["item_table"][item_ids]
    x = jnp.concatenate([user_emb, item_emb], axis=1)
    for i in range(num_layers):
        p = params["fc"][i]
        x = x @ p["w"].T + p["b"]
        x = (x - p["mean"]) * lax.rsqrt(p["var"] + BN_EPS) * p["gamma"] + p["beta"]
        x = jnp.maximum(x, 0.0)
    logit = x @ params["w_out"].T + params["b_out"]
    return jax.nn.sigmoid(logit)


def init_params(key, n_users, n_items, layers):
    assert layers[0] % 2 == 0, "Layers must be an even number."
    embedding_dim = layers[0] // 2
    keys = jax.random.split(key, 4 + 2 * (len(layers) - 1))
    k_iter = iter(keys)

    user_table = jax.random.normal(next(k_iter), (n_users, embedding_dim), jnp.float32) * 0.1
    item_table = jax.random.normal(next(k_iter), (n_items, embedding_dim), jnp.float32) * 0.1

    fc = []
    for in_size, out_size in zip(layers[:-1], layers[1:]):
        bound = 1.0 / jnp.sqrt(jnp.float32(in_size))
        # PyTorch nn.Linear layout: W [out, in], b [out]
        w = jax.random.uniform(next(k_iter), (out_size, in_size), jnp.float32, -1.0, 1.0) * bound
        b = jax.random.uniform(next(k_iter), (out_size,), jnp.float32, -1.0, 1.0) * bound
        fc.append({
            "w": w, "b": b,
            # BatchNorm1d defaults: weight=1, bias=0, running_mean=0, running_var=1
            "gamma": jnp.ones((out_size,), jnp.float32),
            "beta": jnp.zeros((out_size,), jnp.float32),
            "mean": jnp.zeros((out_size,), jnp.float32),
            "var": jnp.ones((out_size,), jnp.float32),
        })

    last = layers[-1]
    bound = 1.0 / jnp.sqrt(jnp.float32(last))
    w_out = jax.random.uniform(next(k_iter), (1, last), jnp.float32, -1.0, 1.0) * bound
    b_out = jax.random.uniform(next(k_iter), (1,), jnp.float32, -1.0, 1.0) * bound

    return {"user_table": user_table, "item_table": item_table,
            "fc": fc, "w_out": w_out, "b_out": b_out}


if __name__ == "__main__":
    n_users, n_items = 10, 12
    layers = [32, 16, 8]
    dropout = 0.2  # unused in eval-mode forward
    num_layers = len(layers) - 1

    key = jax.random.PRNGKey(0)
    k_params, k_u, k_i, k_u2, k_i2 = jax.random.split(key, 5)
    params = init_params(k_params, n_users, n_items, layers)
    prepared = prepare_params(params, num_layers)   # BN fold + bf16 cast, hoisted out of the call

    # Small batch (single ragged block).
    B = 8
    user_ids = jax.random.randint(k_u, (B,), 0, n_users)
    item_ids = jax.random.randint(k_i, (B,), 0, n_items)
    rating = mlp_apply(prepared, user_ids, item_ids, num_layers)
    jax.block_until_ready(rating)
    assert rating.shape == (B, 1)
    assert bool(jnp.all(jnp.isfinite(rating)))
    ref = mlp_reference(params, user_ids, item_ids, num_layers)
    assert bool(jnp.allclose(rating, ref, atol=3e-2, rtol=3e-2))

    # Larger, non-128-multiple batch: exercises multi-tile grid + masked last block.
    B2 = 300
    user_ids2 = jax.random.randint(k_u2, (B2,), 0, n_users)
    item_ids2 = jax.random.randint(k_i2, (B2,), 0, n_items)
    rating2 = mlp_apply(prepared, user_ids2, item_ids2, num_layers)
    jax.block_until_ready(rating2)
    assert rating2.shape == (B2, 1)
    assert bool(jnp.all(jnp.isfinite(rating2)))
    ref2 = mlp_reference(params, user_ids2, item_ids2, num_layers)
    assert bool(jnp.allclose(rating2, ref2, atol=3e-2, rtol=3e-2))

    print("KERNEL_OK")
</pallas_src>

<mosaic_0001>
module attributes {stable_mosaic.version = 11 : i64} {
  func.func @_mlp_kernel(%arg0: i32, %arg1: memref<32x128xbf16, #tpu.memory_space<vmem>>, %arg2: memref<16x32xbf16, #tpu.memory_space<vmem>>, %arg3: memref<16x1xf32, #tpu.memory_space<vmem>>, %arg4: memref<8x16xbf16, #tpu.memory_space<vmem>>, %arg5: memref<8x1xf32, #tpu.memory_space<vmem>>, %arg6: memref<8x1xf32, #tpu.memory_space<vmem>>, %arg7: memref<1x1xf32, #tpu.memory_space<vmem>>, %arg8: memref<1x128xf32, #tpu.memory_space<vmem>>) attributes {dimension_semantics = [#tpu.dimension_semantics<parallel>], iteration_bounds = array<i64: 1>, scalar_prefetch = 0 : i64, scratch_operands = 0 : i64, tpu.core_type = #tpu.core_type<tc>, window_params = [{transform_indices = @transform_0, window_bounds = array<i64: 32, 128>}, {pipeline_mode = #tpu.pipeline_mode<synchronous>, transform_indices = @transform_1, window_bounds = array<i64: 16, 32>}, {pipeline_mode = #tpu.pipeline_mode<synchronous>, transform_indices = @transform_2, window_bounds = array<i64: 16, 1>}, {pipeline_mode = #tpu.pipeline_mode<synchronous>, transform_indices = @transform_3, window_bounds = array<i64: 8, 16>}, {pipeline_mode = #tpu.pipeline_mode<synchronous>, transform_indices = @transform_4, window_bounds = array<i64: 8, 1>}, {pipeline_mode = #tpu.pipeline_mode<synchronous>, transform_indices = @transform_5, window_bounds = array<i64: 8, 1>}, {pipeline_mode = #tpu.pipeline_mode<synchronous>, transform_indices = @transform_6, window_bounds = array<i64: 1, 1>}, {transform_indices = @transform_7, window_bounds = array<i64: 1, 128>}]} {
    %c0 = arith.constant 0 : index
    %c0_0 = arith.constant 0 : index
    %0 = vector.load %arg1[%c0, %c0_0] : memref<32x128xbf16, #tpu.memory_space<vmem>>, vector<32x128xbf16>
    %c0_1 = arith.constant 0 : index
    %c0_2 = arith.constant 0 : index
    %1 = vector.load %arg2[%c0_1, %c0_2] : memref<16x32xbf16, #tpu.memory_space<vmem>>, vector<16x32xbf16>
    %c0_3 = arith.constant 0 : index
    %c0_4 = arith.constant 0 : index
    %2 = vector.load %arg3[%c0_3, %c0_4] : memref<16x1xf32, #tpu.memory_space<vmem>>, vector<16x1xf32>
    %cst = arith.constant dense<0.000000e+00> : vector<16x128xf32>
    %3 = tpu.matmul %1, %0, %cst {dimension_numbers = #tpu.dot_dimension_numbers<[1], [0], [0], [1], [0, 0, 1, 1], [], []>} : vector<16x32xbf16>, vector<32x128xbf16>, vector<16x128xf32> -> vector<16x128xf32>
    %4 = vector.broadcast %2 : vector<16x1xf32> to vector<16x128xf32>
    %5 = arith.addf %3, %4 : vector<16x128xf32>
    %cst_5 = arith.constant 0.000000e+00 : f32
    %6 = vector.broadcast %cst_5 : f32 to vector<16x128xf32>
    %7 = arith.maximumf %5, %6 : vector<16x128xf32>
    %8 = arith.truncf %7 : vector<16x128xf32> to vector<16x128xbf16>
    %c0_6 = arith.constant 0 : index
    %c0_7 = arith.constant 0 : index
    %9 = vector.load %arg4[%c0_6, %c0_7] : memref<8x16xbf16, #tpu.memory_space<vmem>>, vector<8x16xbf16>
    %c0_8 = arith.constant 0 : index
    %c0_9 = arith.constant 0 : index
    %10 = vector.load %arg5[%c0_8, %c0_9] : memref<8x1xf32, #tpu.memory_space<vmem>>, vector<8x1xf32>
    %cst_10 = arith.constant dense<0.000000e+00> : vector<8x128xf32>
    %11 = tpu.matmul %9, %8, %cst_10 {dimension_numbers = #tpu.dot_dimension_numbers<[1], [0], [0], [1], [0, 0, 1, 1], [], []>} : vector<8x16xbf16>, vector<16x128xbf16>, vector<8x128xf32> -> vector<8x128xf32>
    %12 = vector.broadcast %10 : vector<8x1xf32> to vector<8x128xf32>
    %13 = arith.addf %11, %12 : vector<8x128xf32>
    %cst_11 = arith.constant 0.000000e+00 : f32
    %14 = vector.broadcast %cst_11 : f32 to vector<8x128xf32>
    %15 = arith.maximumf %13, %14 : vector<8x128xf32>
    %c0_12 = arith.constant 0 : index
    %c0_13 = arith.constant 0 : index
    %16 = vector.load %arg6[%c0_12, %c0_13] : memref<8x1xf32, #tpu.memory_space<vmem>>, vector<8x1xf32>
    %17 = vector.broadcast %16 : vector<8x1xf32> to vector<8x128xf32>
    %18 = arith.mulf %15, %17 : vector<8x128xf32>
    %cst_14 = arith.constant dense<0.000000e+00> : vector<128xf32>
    %19 = vector.multi_reduction <add>, %18, %cst_14 [0] : vector<8x128xf32> to vector<128xf32>
    %20 = vector.shape_cast %19 : vector<128xf32> to vector<1x128xf32>
    %c0_15 = arith.constant 0 : index
    %c0_16 = arith.constant 0 : index
    %21 = vector.load %arg7[%c0_15, %c0_16] : memref<1x1xf32, #tpu.memory_space<vmem>>, vector<1x1xf32>
    %22 = vector.broadcast %21 : vector<1x1xf32> to vector<1x128xf32>
    %23 = arith.addf %20, %22 : vector<1x128xf32>
    %cst_17 = arith.constant 0.000000e+00 : f32
    %24 = vector.broadcast %cst_17 : f32 to vector<1x128xf32>
    %25 = arith.subf %24, %23 : vector<1x128xf32>
    %26 = math.exp %25 : vector<1x128xf32>
    %cst_18 = arith.constant 1.000000e+00 : f32
    %27 = vector.broadcast %cst_18 : f32 to vector<1x128xf32>
    %28 = arith.addf %27, %26 : vector<1x128xf32>
    %29 = tpu.reciprocal %28 {approx = true} : vector<1x128xf32> -> vector<1x128xf32>
    %c0_19 = arith.constant 0 : index
    %c0_20 = arith.constant 0 : index
    %30 = vector.load %arg8[%c0_19, %c0_20] : memref<1x128xf32, #tpu.memory_space<vmem>>, vector<1x128xf32>
    tpu.vector_store %arg8[%c0_19, %c0_20], %29 {strides = array<i32>} : memref<1x128xf32, #tpu.memory_space<vmem>>, vector<1x128xf32>,
    return
  }
  func.func @transform_0(%arg0: i32) -> (i32, i32) {
    %c0_i32 = arith.constant 0 : i32
    %c0_i32_0 = arith.constant 0 : i32
    return %c0_i32, %arg0 : i32, i32
  }
  func.func @transform_1(%arg0: i32) -> (i32, i32) {
    %c0_i32 = arith.constant 0 : i32
    %c0_i32_0 = arith.constant 0 : i32
    %c0_i32_1 = arith.constant 0 : i32
    return %c0_i32, %c0_i32_0 : i32, i32
  }
  func.func @transform_2(%arg0: i32) -> (i32, i32) {
    %c0_i32 = arith.constant 0 : i32
    %c0_i32_0 = arith.constant 0 : i32
    %c0_i32_1 = arith.constant 0 : i32
    return %c0_i32, %c0_i32_0 : i32, i32
  }
  func.func @transform_3(%arg0: i32) -> (i32, i32) {
    %c0_i32 = arith.constant 0 : i32
    %c0_i32_0 = arith.constant 0 : i32
    %c0_i32_1 = arith.constant 0 : i32
    return %c0_i32, %c0_i32_0 : i32, i32
  }
  func.func @transform_4(%arg0: i32) -> (i32, i32) {
    %c0_i32 = arith.constant 0 : i32
    %c0_i32_0 = arith.constant 0 : i32
    %c0_i32_1 = arith.constant 0 : i32
    return %c0_i32, %c0_i32_0 : i32, i32
  }
  func.func @transform_5(%arg0: i32) -> (i32, i32) {
    %c0_i32 = arith.constant 0 : i32
    %c0_i32_0 = arith.constant 0 : i32
    %c0_i32_1 = arith.constant 0 : i32
    return %c0_i32, %c0_i32_0 : i32, i32
  }
  func.func @transform_6(%arg0: i32) -> (i32, i32) {
    %c0_i32 = arith.constant 0 : i32
    %c0_i32_0 = arith.constant 0 : i32
    %c0_i32_1 = arith.constant 0 : i32
    return %c0_i32, %c0_i32_0 : i32, i32
  }
  func.func @transform_7(%arg0: i32) -> (i32, i32) {
    %c0_i32 = arith.constant 0 : i32
    %c0_i32_0 = arith.constant 0 : i32
    return %c0_i32, %arg0 : i32, i32
  }
}

</mosaic_0001>

<bundles_post_ra>
// kernel: mlp_apply.1
= control target key start
LH: loop header
LB: loop body
LE: loop exit
PB: predicated region body
PF: predicated region fallthrough
CT: control target
= control target key end

     0   :  { %s353_s0 = inlined_call_operand.vmem [shape: bf16[32,8], index: 0, kind: input, shape index: {}]   ;;  %s354_s1 = inlined_call_operand.vmem [shape: bf16[16,32], index: 1, kind: input, shape index: {}]   ;;  %s355_s2 = inlined_call_operand.vmem [shape: f32[16,1], index: 2, kind: input, shape index: {}]   ;;  %s356_s3 = inlined_call_operand.vmem [shape: bf16[8,16], index: 3, kind: input, shape index: {}]   ;;  %s357_s4 = inlined_call_operand.vmem [shape: f32[8,1], index: 4, kind: input, shape index: {}]   ;;  %s358_s5 = inlined_call_operand.vmem [shape: f32[8,1], index: 5, kind: input, shape index: {}]   ;;  %s359_s6 = inlined_call_operand.<no memory space> [shape: f32[1,1], index: 6, kind: input, shape index: {}]   ;;  %s360_s7 = inlined_call_operand.hbm [shape: f32[1,8], index: 7, kind: output, shape index: {}]  }
   0x1   :  { %v12_v0 = vstv %s359_s6 }
   0x2   :  { %13 = vst [vmem:[#allocation2] sm:$0x1] %v12_v0 }
   0x3   :  { %v239_v1 = vld [vmem:[%s353_s0] sm:$0xff]   ;;  %v270_v2 = vmov 0.0   ;;  %v240_v3 = vld [vmem:[%s353_s0 + $0x8] sm:$0xff]   ;;  %vm271_vm0 = vmmov 0   ;;  %v272_v5 = vmov 0  }
   0x4   :  { %219 = vmatprep.subr.bf16.mxu0 %v270_v2  ;;  %227 = vmatprep.subr.bf16.mxu1 %v270_v2  ;;  %v36_v4 = vld [vmem:[%s355_s2] sm:$0xff] }
   0x5   :  { %220 = vmatpush3.bf16.msra.mxu0 %v239_v1  ;;  %223 = vmatprep.mubr.msk.bf16.mxu0 %vm271_vm0, %v270_v2 }
   0x6   :  { %221 = vmatprep.subr.bf16.mxu0 %v270_v2  ;;  %229 = vmatprep.mubr.msk.bf16.mxu1 %vm271_vm0, %v270_v2 }
   0x7   :  { %237 = vset.pattern.permute.xlu0 %v272_v5  ;;  %238 = vset.pattern.permute.xlu1 %v272_v5 }
   0x8   :  { %14 = vsyncpa [#allocation4], 0  ;;  %v241_v6 = vld [vmem:[%s354_s1] sm:$0xff]   ;;  %40 = vperm.xlu0 %237, %v36_v4   ;;  %vm65_vm1 = vcmask 261120   ;;  %v37_v7 = vld [vmem:[%s355_s2 + $0x8] sm:$0xff]  ;;  %vm120_vm2 = vcmask 130048   ;;  %v184_v31 = vlaneseq }
   0x9   :  { %222 = vmatpush3.bf16.msra.mxu0 %v240_v3  ;;  %v178_v8 = vld [vmem:[#allocation2] sm:$0x1] }
   0xa   :  { %v114_v9 = vld [vmem:[%s357_s4] sm:$0xff]  ;;  %v185_v34 = vshrl.u32 %v184_v31, 7 }
   0xb   :  { %117 = vperm.xlu1 %238, %v114_v9   ;;  %v165_v10 = vld [vmem:[%s358_s5] sm:$0xff] }
   0xc   :  { %224 = vmatmul.mubr.msk.bf16.vlgmr.msra.gmra.mrb[0].mxu0 %vm65_vm1, %v241_v6  ;;  %45 = vperm.xlu0 %237, %v37_v7   ;;  %v113_v22 = vld [vmem:[%s356_s3] sm:$0xf]  ;;  %v186_v37 = vsub.s32 0, %v185_v34  ;;  %s273_s3 = smov [#allocation3]  }
   0xd   :  { %s201_s4 = sshll.u32 %s273_s3, 4  ;;  %s202_s4 = int_to_ptr.vmem [resolvable:$true] %s201_s4 }
   0xe   :  { %s246_s5 = scalar_lea.vmem %s202_s4, 16  ;;  %s250_s15 = scalar_lea.vmem %s202_s4, 32 }
   0xf   :  { %168 = vperm.xlu1 %238, %v165_v10   ;;  %p247_p0 = scmp.ne.s32.totalorder %s202_s4, %s246_s5  ;;  %p251_p1 = scmp.lt.s32.totalorder %s202_s4, %s202_s4 }
  0x10   :  { %181 = vperm.xlu0 %237, %v178_v8   ;;  %p252_p2 = scmp.lt.s32.totalorder %s250_s15, %s246_s5 }
  0x12   :  { %p253_p3 = por %p252_p2, %p251_p1 }
  0x14   :  { %p254_p4 = pnand %p253_p3, %p247_p0 }
  0x87   :  { %v41_v11 = vpop.permute.xlu0 %40 }
  0x8a   :  { %v118_v23 = vpop.permute.xlu1 %117 }
  0x8b   :  { %v46_v15 = vpop.permute.xlu0 %45 }
  0x8e   :  { %v169_v30 = vpop.permute.xlu1 %168 }
  0x8f   :  { %v182_v39 = vpop.permute.xlu0 %181 }
  0x90   :  { %v187_v41 = vrot.slane %v182_v39, %v186_v37 }
  0xdf   :  { %v103_v12 = vpop.f32.mrb[0].mxu0 }
  0xe0   :  { %v104_v13 = vadd.f32 %v103_v12, %v41_v11  ;;  %v225_v14 = vpop.f32.mrb[1].mxu0 }
  0xe1   :  { %v106_v16 = vpop.f32.mrb[2].mxu0 }
  0xe2   :  { %v107_v17 = vadd.f32 %v106_v16, %v46_v15  ;;  %v226_v18 = vpop.f32.mrb[3].mxu0  ;;  %v110_v19 = vmax.f32 %v104_v13, 0.0 }
  0xe4   :  { %v111_v20 = vmax.f32 %v107_v17, 0.0 }
  0xe6   :  { %v112_v21 = vpack.c.bf16 %v111_v20, %v110_v19 }
  0xe8   :  { %228 = vmatpush3.bf16.msra.mxu1 %v112_v21 }
  0xeb   :  { %230 = vmatmul.mubr.msk.bf16.vlgmr.msra.gmra.mrb[0].mxu1 %vm120_vm2, %v113_v22 }
 0x1be   :  { %v158_v24 = vpop.f32.mrb[0].mxu1 }
 0x1bf   :  { %v159_v25 = vadd.f32 %v158_v24, %v118_v23  ;;  %v231_v26 = vpop.f32.mrb[1].mxu1 }
 0x1c0   :  { %v161_v27 = vpop.f32.mrb[2].mxu1 }
 0x1c1   :  { %v164_v28 = vmax.f32 %v159_v25, 0.0  ;;  %v232_v29 = vpop.f32.mrb[3].mxu1 }
 0x1c3   :  { %v171_v32 = vmul.f32 %v169_v30, %v164_v28 }
 0x1c5   :  { %v172_v33 = vrot.slane %v171_v32, 4 }
 0x1c7   :  { %v173_v35 = vadd.f32 %v172_v33, %v171_v32 }
 0x1c9   :  { %v174_v36 = vrot.slane %v173_v35, 2 }
 0x1cb   :  { %v175_v38 = vadd.f32 %v174_v36, %v173_v35 }
 0x1cd   :  { %v176_v40 = vrot.slane %v175_v38, 1 }
 0x1cf   :  { %v177_v42 = vadd.f32 %v176_v40, %v175_v38 }
 0x1d1   :  { %v188_v43 = vadd.f32 %v187_v41, %v177_v42 }
 0x1d3   :  { %v189_v44 = vsub.f32 0.0, %v188_v43 }
 0x1d5   :  { %v190_v45 = vmul.f32 1.442695, %v189_v44 }
 0x1d7   :  { %242 = vpow2.f32 %v190_v45 }
 0x1e1   :  { %v243_v46 = vpop.eup %242 }
 0x1e2   :  { %v192_v47 = vadd.f32 1.0, %v243_v46 }
 0x1e4   :  { %244 = vrcp.f32 %v192_v47 }
 0x1ee   :  { %v245_v48 = vpop.eup %244 }
 0x1ef   :  { %194 = vst [vmem:[#allocation3] sm:$0x1] %v245_v48 }
 0x1f0   :  { %257 = shalt.err (!%p254_p4)
}
 0x1f1   :  { %s258_s18 = scalar_lea.hbm %s360_s7, 16 }
 0x1f2   :  { %p259_p5 = scmp.ne.s32.totalorder %s360_s7, %s258_s18  ;;  %p262_p6 = scmp.lt.u32.totalorder %s258_s18, %s360_s7 }
 0x1f4   :  { %p264_p7 = pnand %p262_p6, %p259_p5 }
 0x1f6   :  { %267 = shalt.err (!%p264_p7)
}
 0x1f7   :  { %204 = dma.vmem_to_hbm [thread:$0]  %s202_s4, 16, %s360_s7, [#allocation4]  }
 0x1f8   :  { %268 = dma.done.wait [#allocation4], 16  }
 0x1f9   :  { %269 = vsyncadd [#allocation4], 4294967280 }
 0x1fa   :  { %208 = vsyncpa [#allocation4], 1 }

</bundles_post_ra>
